<compile_context>
chip_gen: v7x
topology: tpu7x:2x2x1
jax: 0.10.0
libtpu: 0.0.40
codegen_flags: <defaults>
</compile_context>

<pallas_src>
import jax
import jax.numpy as jnp
from jax.experimental import pallas as pl
from jax.experimental.pallas import tpu as pltpu


def _conditioner_kernel(obs_ref, fut_ref, wo_ref, wf_ref, b_ref, o_ref):
    # Two MXU matmuls (f32 accumulation) + f32 bias add + one lane-dense store.
    acc = jnp.dot(obs_ref[...], wo_ref[...], preferred_element_type=jnp.float32)
    acc = acc + jnp.dot(fut_ref[...], wf_ref[...], preferred_element_type=jnp.float32)
    o_ref[...] = (acc + b_ref[...]).astype(o_ref.dtype)


def _fuse_time_conv(wt_seg, w_conv):
    """Fold circular Conv1d(k=3, pad=1, no bias) followed by the seq-axis Linear slice.

    wt_seg: [T, L] slice of the Linear weight, w_conv: [H, C, 3] (torch Conv1d layout).
    Returns W_comb: [L*C, T*H] with
      W_comb[l*C + c, t*H + h] = sum_k wt_seg[t, (l - k + 1) % L] * w_conv[h, c, k]
    (the roll absorbs the circular padding).  Computed in f32."""
    t_, l_ = wt_seg.shape
    h_, c_, k_ = w_conv.shape
    w = jnp.zeros((l_, c_, t_, h_), jnp.float32)
    for k in range(k_):
        w = w + jnp.einsum('tl,hc->lcth',
                           jnp.roll(wt_seg.astype(jnp.float32), k - 1, axis=1),
                           w_conv[:, :, k].astype(jnp.float32))
    return w.reshape(l_ * c_, t_ * h_)


def cnn_conditioner(observed, future, w_obs, w_fut, w_time, b_time, *,
                    bblk=None, compute_dtype=jnp.bfloat16):
    """observed: [B, L, C], future: [B, Lf, Cf]
       w_obs: [H, C, 3], w_fut: [H, Cf, 3]   (torch Conv1d weight layout)
       w_time: [T, L+Lf], b_time: [T]        (torch Linear layout)
       returns: [B, T, H] float32."""
    B, L, C = observed.shape
    _, Lf, Cf = future.shape
    H = w_obs.shape[0]
    T = w_time.shape[0]

    if bblk is None:
        # Prefer >=2 parallel grid blocks when B allows (v7x megacore), keeping each
        # block's sublane count a multiple of 8; otherwise one grid step.
        bblk = B // 2 if (B % 16 == 0) else B
    assert B % bblk == 0, "batch block must divide batch"
    assert bblk == B or bblk % 8 == 0, "bblk < B must be a multiple of 8 (sublane rule)"
    nb = B // bblk

    # One-time wrapper-side transforms (fusion in f32, then cast MXU operands).
    obs2d = observed.reshape(B, L * C).astype(compute_dtype)                    # [B, L*C]
    fut2d = future.reshape(B, Lf * Cf).astype(compute_dtype)                    # [B, Lf*Cf]
    w_obs_comb = _fuse_time_conv(w_time[:, :L], w_obs).astype(compute_dtype)    # [L*C,  T*H]
    w_fut_comb = _fuse_time_conv(w_time[:, L:], w_fut).astype(compute_dtype)    # [Lf*Cf,T*H]
    bias_flat = jnp.repeat(b_time.astype(jnp.float32), H)[None, :]              # [1, T*H] f32

    flops = 2 * B * T * H * (L * C + Lf * Cf)
    isz = jnp.dtype(compute_dtype).itemsize
    bytes_accessed = ((obs2d.size + fut2d.size + w_obs_comb.size + w_fut_comb.size) * isz
                      + bias_flat.size * 4 + B * T * H * 4)

    out_flat = pl.pallas_call(
        _conditioner_kernel,
        out_shape=jax.ShapeDtypeStruct((B, T * H), jnp.float32),
        grid=(nb,),
        in_specs=[
            pl.BlockSpec((bblk, L * C), lambda b: (b, 0)),
            pl.BlockSpec((bblk, Lf * Cf), lambda b: (b, 0)),
            # Grid-invariant weights/bias: same block index every step -> DMA'd once.
            # (If these ever grow and nb > 1, single-buffer them via pipeline_mode.)
            pl.BlockSpec((L * C, T * H), lambda b: (0, 0)),
            pl.BlockSpec((Lf * Cf, T * H), lambda b: (0, 0)),
            pl.BlockSpec((1, T * H), lambda b: (0, 0)),
        ],
        out_specs=pl.BlockSpec((bblk, T * H), lambda b: (b, 0)),
        compiler_params=pltpu.CompilerParams(dimension_semantics=("parallel",)),
        cost_estimate=pl.CostEstimate(flops=int(flops), transcendentals=0,
                                      bytes_accessed=int(bytes_accessed)),
    )(obs2d, fut2d, w_obs_comb, w_fut_comb, bias_flat)

    return out_flat.reshape(B, T, H)


def _reference(observed, future, w_obs, w_fut, w_time, b_time):
    """Pure-JAX replica of the PyTorch forward (correctness check)."""
    def conv_circ(x, w):  # x: [B, L, C], w: [H, C, 3]
        B, L, _ = x.shape
        xp = jnp.transpose(x, (0, 2, 1))                              # [B, C, L]
        xpad = jnp.concatenate([xp[..., -1:], xp, xp[..., :1]], -1)   # circular pad
        out = jnp.zeros((B, w.shape[0], L), jnp.float32)
        for k in range(3):
            out = out + jnp.einsum('bcl,hc->bhl', xpad[..., k:k + L], w[..., k])
        return jnp.transpose(out, (0, 2, 1))                          # [B, L, H]

    e = jnp.concatenate([conv_circ(observed, w_obs),
                         conv_circ(future, w_fut)], axis=1)           # [B, L+Lf, H]
    return jnp.einsum('blh,tl->bth', e, w_time) + b_time[None, :, None]


if __name__ == "__main__":
    # module hyperparameters (small, consistent with the forward pass)
    B, C, L = 2, 4, 16            # batch, seq_channels, seq_length
    H = 32                        # hidden_size
    T = 8                         # target_seq_length
    Cf, Lf = 3, 8                 # future_seq_channels, future_seq_length

    key = jax.random.PRNGKey(0)
    k1, k2, k3, k4, k5, k6 = jax.random.split(key, 6)

    observed = jax.random.normal(k1, (B, L, C), jnp.float32)
    future = jax.random.normal(k2, (B, Lf, Cf), jnp.float32)

    # deterministic parameter init (torch-layout shapes)
    w_obs = 0.1 * jax.random.normal(k3, (H, C, 3), jnp.float32)     # Conv1d weight
    w_fut = 0.1 * jax.random.normal(k4, (H, Cf, 3), jnp.float32)    # Conv1d weight (future)
    w_time = 0.1 * jax.random.normal(k5, (T, L + Lf), jnp.float32)  # Linear weight
    b_time = 0.1 * jax.random.normal(k6, (T,), jnp.float32)         # Linear bias

    ref = _reference(observed, future, w_obs, w_fut, w_time, b_time)

    # f32 path: tight correctness check.
    out_f32 = cnn_conditioner(observed, future, w_obs, w_fut, w_time, b_time,
                              compute_dtype=jnp.float32)
    out_f32 = jax.block_until_ready(out_f32)
    assert out_f32.shape == (B, T, H), out_f32.shape
    assert jnp.allclose(out_f32, ref, atol=1e-4, rtol=1e-4), \
        float(jnp.abs(out_f32 - ref).max())

    # default bf16 MXU-operand path: f32 accumulation, looser tolerance.
    out_bf16 = jax.block_until_ready(
        cnn_conditioner(observed, future, w_obs, w_fut, w_time, b_time))
    assert out_bf16.shape == (B, T, H), out_bf16.shape
    assert jnp.allclose(out_bf16, ref, atol=2e-2, rtol=2e-2), \
        float(jnp.abs(out_bf16 - ref).max())

    print("KERNEL_OK")
</pallas_src>

<mosaic_0001>
module attributes {stable_mosaic.version = 11 : i64} {
  func.func @_conditioner_kernel(%arg0: i32, %arg1: memref<2x64xf32, #tpu.memory_space<vmem>>, %arg2: memref<2x24xf32, #tpu.memory_space<vmem>>, %arg3: memref<64x256xf32, #tpu.memory_space<vmem>>, %arg4: memref<24x256xf32, #tpu.memory_space<vmem>>, %arg5: memref<1x256xf32, #tpu.memory_space<vmem>>, %arg6: memref<2x256xf32, #tpu.memory_space<vmem>>) attributes {dimension_semantics = [#tpu.dimension_semantics<parallel>], iteration_bounds = array<i64: 1>, scalar_prefetch = 0 : i64, scratch_operands = 0 : i64, tpu.core_type = #tpu.core_type<tc>, window_params = [{transform_indices = @transform_0, window_bounds = array<i64: 2, 64>}, {transform_indices = @transform_1, window_bounds = array<i64: 2, 24>}, {pipeline_mode = #tpu.pipeline_mode<synchronous>, transform_indices = @transform_2, window_bounds = array<i64: 64, 256>}, {pipeline_mode = #tpu.pipeline_mode<synchronous>, transform_indices = @transform_3, window_bounds = array<i64: 24, 256>}, {pipeline_mode = #tpu.pipeline_mode<synchronous>, transform_indices = @transform_4, window_bounds = array<i64: 1, 256>}, {transform_indices = @transform_5, window_bounds = array<i64: 2, 256>}]} {
    %c0 = arith.constant 0 : index
    %c0_0 = arith.constant 0 : index
    %0 = vector.load %arg1[%c0, %c0_0] : memref<2x64xf32, #tpu.memory_space<vmem>>, vector<2x64xf32>
    %c0_1 = arith.constant 0 : index
    %c0_2 = arith.constant 0 : index
    %1 = vector.load %arg3[%c0_1, %c0_2] : memref<64x256xf32, #tpu.memory_space<vmem>>, vector<64x256xf32>
    %cst = arith.constant dense<0.000000e+00> : vector<2x256xf32>
    %2 = tpu.matmul %0, %1, %cst {dimension_numbers = #tpu.dot_dimension_numbers<[1], [0], [0], [1], [0, 0, 1, 1], [], []>} : vector<2x64xf32>, vector<64x256xf32>, vector<2x256xf32> -> vector<2x256xf32>
    %c0_3 = arith.constant 0 : index
    %c0_4 = arith.constant 0 : index
    %3 = vector.load %arg2[%c0_3, %c0_4] : memref<2x24xf32, #tpu.memory_space<vmem>>, vector<2x24xf32>
    %c0_5 = arith.constant 0 : index
    %c0_6 = arith.constant 0 : index
    %4 = vector.load %arg4[%c0_5, %c0_6] : memref<24x256xf32, #tpu.memory_space<vmem>>, vector<24x256xf32>
    %cst_7 = arith.constant dense<0.000000e+00> : vector<2x256xf32>
    %5 = tpu.matmul %3, %4, %cst_7 {dimension_numbers = #tpu.dot_dimension_numbers<[1], [0], [0], [1], [0, 0, 1, 1], [], []>} : vector<2x24xf32>, vector<24x256xf32>, vector<2x256xf32> -> vector<2x256xf32>
    %6 = arith.addf %2, %5 : vector<2x256xf32>
    %c0_8 = arith.constant 0 : index
    %c0_9 = arith.constant 0 : index
    %7 = vector.load %arg5[%c0_8, %c0_9] : memref<1x256xf32, #tpu.memory_space<vmem>>, vector<1x256xf32>
    %8 = vector.broadcast %7 : vector<1x256xf32> to vector<2x256xf32>
    %9 = arith.addf %6, %8 : vector<2x256xf32>
    %c0_10 = arith.constant 0 : index
    %c0_11 = arith.constant 0 : index
    %10 = vector.load %arg6[%c0_10, %c0_11] : memref<2x256xf32, #tpu.memory_space<vmem>>, vector<2x256xf32>
    tpu.vector_store %arg6[%c0_10, %c0_11], %9 {strides = array<i32>} : memref<2x256xf32, #tpu.memory_space<vmem>>, vector<2x256xf32>,
    return
  }
  func.func @transform_0(%arg0: i32) -> (i32, i32) {
    %c0_i32 = arith.constant 0 : i32
    %c0_i32_0 = arith.constant 0 : i32
    return %arg0, %c0_i32 : i32, i32
  }
  func.func @transform_1(%arg0: i32) -> (i32, i32) {
    %c0_i32 = arith.constant 0 : i32
    %c0_i32_0 = arith.constant 0 : i32
    return %arg0, %c0_i32 : i32, i32
  }
  func.func @transform_2(%arg0: i32) -> (i32, i32) {
    %c0_i32 = arith.constant 0 : i32
    %c0_i32_0 = arith.constant 0 : i32
    %c0_i32_1 = arith.constant 0 : i32
    return %c0_i32, %c0_i32_0 : i32, i32
  }
  func.func @transform_3(%arg0: i32) -> (i32, i32) {
    %c0_i32 = arith.constant 0 : i32
    %c0_i32_0 = arith.constant 0 : i32
    %c0_i32_1 = arith.constant 0 : i32
    return %c0_i32, %c0_i32_0 : i32, i32
  }
  func.func @transform_4(%arg0: i32) -> (i32, i32) {
    %c0_i32 = arith.constant 0 : i32
    %c0_i32_0 = arith.constant 0 : i32
    %c0_i32_1 = arith.constant 0 : i32
    return %c0_i32, %c0_i32_0 : i32, i32
  }
  func.func @transform_5(%arg0: i32) -> (i32, i32) {
    %c0_i32 = arith.constant 0 : i32
    %c0_i32_0 = arith.constant 0 : i32
    return %arg0, %c0_i32 : i32, i32
  }
}

</mosaic_0001>

<bundles_post_ra>
// kernel: tpu_custom_call.1
= control target key start
LH: loop header
LB: loop body
LE: loop exit
PB: predicated region body
PF: predicated region fallthrough
CT: control target
= control target key end

     0   :  { %10 = vsyncpa [#allocation3], 0  ;;  %s499_s0 = inlined_call_operand.hbm [shape: f32[2,64], index: 0, kind: input, shape index: {}]   ;;  %s500_s1 = inlined_call_operand.vmem [shape: f32[2,24], index: 1, kind: input, shape index: {}]   ;;  %s501_s2 = inlined_call_operand.hbm [shape: f32[64,256], index: 2, kind: input, shape index: {}]   ;;  %s502_s3 = inlined_call_operand.hbm [shape: f32[24,256], index: 3, kind: input, shape index: {}]   ;;  %s503_s4 = inlined_call_operand.vmem [shape: f32[1,256], index: 4, kind: input, shape index: {}]   ;;  %s504_s5 = inlined_call_operand.hbm [shape: f32[2,256], index: 5, kind: output, shape index: {}]  }
   0x1   :  { %11 = vsyncpa [#allocation6], 0 }
   0x2   :  { %12 = vsyncpa [#allocation4], 0  ;;  %s402_s18 = smov [#allocation5]   ;;  %s308_s22 = scalar_lea.hbm %s501_s2, 2048 }
   0x3   :  { %s30_s19 = sshll.u32 %s402_s18, 4  ;;  %p309_p0 = scmp.ne.s32.totalorder %s501_s2, %s308_s22  ;;  %s31_s19 = int_to_ptr.vmem [resolvable:$true] %s30_s19 }
   0x4   :  { %p312_p1 = scmp.lt.u32.totalorder %s308_s22, %s501_s2 }
   0x6   :  { %p314_p2 = pnand %p312_p1, %p309_p0 }
   0x8   :  { %317 = shalt.err (!%p314_p2)
}
   0x9   :  { %s318_s27 = scalar_lea.vmem %s31_s19, 2048  ;;  %p323_p4 = scmp.lt.s32.totalorder %s31_s19, %s31_s19 }
   0xa   :  { %p319_p3 = scmp.ne.s32.totalorder %s31_s19, %s318_s27  ;;  %p324_p5 = scmp.lt.s32.totalorder %s318_s27, %s318_s27 }
   0xc   :  { %p325_p6 = por %p324_p5, %p323_p4 }
   0xe   :  { %p326_p7 = pnand %p325_p6, %p319_p3 }
  0x10   :  { %329 = shalt.err (!%p326_p7)
}
  0x11   :  { %s403_s28 = smov 256   ;;  %s404_s29 = smov 16  }
  0x12   :  { %36 = dma.hbm_to_vmem [thread:$0]  %s501_s2, 2048, %s31_s19, [#allocation6], %s403_s28, %s403_s28, %s404_s29  }
  0x13   :  { %s405_s7 = smov [#allocation2]   ;;  %s406_s9 = smov [#allocation7]  }
  0x14   :  { %s19_s8 = sshll.u32 %s405_s7, 4  ;;  %s42_s10 = sshll.u32 %s406_s9, 4  ;;  %s20_s8 = int_to_ptr.vmem [resolvable:$true] %s19_s8  ;;  %s43_s10 = int_to_ptr.vmem [resolvable:$true] %s42_s10 }
  0x15   :  { %s330_s13 = scalar_lea.hbm %s499_s0, 32 }
  0x16   :  { %p331_p8 = scmp.ne.s32.totalorder %s499_s0, %s330_s13  ;;  %p334_p9 = scmp.lt.u32.totalorder %s330_s13, %s499_s0 }
  0x18   :  { %p336_p10 = pnand %p334_p9, %p331_p8 }
  0x1a   :  { %339 = shalt.err (!%p336_p10)
}
  0x1b   :  { %s340_s2 = scalar_lea.vmem %s20_s8, 32  ;;  %p345_p12 = scmp.lt.s32.totalorder %s20_s8, %s20_s8 }
  0x1c   :  { %p341_p11 = scmp.ne.s32.totalorder %s20_s8, %s340_s2  ;;  %p346_p13 = scmp.lt.s32.totalorder %s340_s2, %s340_s2 }
  0x1e   :  { %p347_p0 = por %p346_p13, %p345_p12 }
  0x20   :  { %p348_p1 = pnand %p347_p0, %p341_p11 }
  0x22   :  { %351 = shalt.err (!%p348_p1)
}
  0x23   :  { %22 = dma.hbm_to_vmem [thread:$0]  %s499_s0, 32, %s20_s8, [#allocation3]  }
  0x24   :  { %s352_s22 = scalar_lea.hbm %s502_s3, 768 }
  0x25   :  { %p353_p2 = scmp.ne.s32.totalorder %s502_s3, %s352_s22  ;;  %p356_p3 = scmp.lt.u32.totalorder %s352_s22, %s502_s3 }
  0x27   :  { %p358_p4 = pnand %p356_p3, %p353_p2 }
  0x29   :  { %361 = shalt.err (!%p358_p4)
}
  0x2a   :  { %s362_s27 = scalar_lea.vmem %s43_s10, 768  ;;  %p367_p6 = scmp.lt.s32.totalorder %s43_s10, %s43_s10 }
  0x2b   :  { %p363_p5 = scmp.ne.s32.totalorder %s43_s10, %s362_s27  ;;  %p368_p7 = scmp.lt.s32.totalorder %s362_s27, %s362_s27 }
  0x2d   :  { %p369_p8 = por %p368_p7, %p367_p6 }
  0x2f   :  { %p370_p9 = pnand %p369_p8, %p363_p5 }
  0x31   :  { %373 = shalt.err (!%p370_p9)
}
  0x32   :  { %48 = dma.hbm_to_vmem [thread:$0]  %s502_s3, 768, %s43_s10, [#allocation6], %s403_s28, %s403_s28, %s404_s29  }
  0x33   :  { %396 = dma.done.wait [#allocation3], 32  }
  0x34   :  { %397 = vsyncadd [#allocation3], 4294967264 }
  0x35   :  { %398 = dma.done.wait [#allocation6], 2816  }
  0x36   :  { %399 = vsyncadd [#allocation6], 4294964480  ;;  %v407_v0 = vmov 0.0   ;;  %v62_v1 = vld [vmem:[#allocation5 + $0x8] sm:$0xff]  ;;  %v64_v2 = vld [vmem:[#allocation5 + $0x18] sm:$0xff]  ;;  %vm84_vm0 = vcmask 195584   ;;  %v236_v35 = vlaneseq }
  0x37   :  { %152 = vmatprep.mubr.f32.mxu1 %v407_v0  ;;  %227 = vmatprep.mubr.f32.mxu0 %v407_v0  ;;  %v61_v3 = vld [vmem:[#allocation5] sm:$0xff]  ;;  %v283_v4 = vpack.c.bf16 %v64_v2, %v62_v1  ;;  %v63_v5 = vld [vmem:[#allocation5 + $0x10] sm:$0xff]  ;;  %v66_v6 = vld [vmem:[#allocation5 + $0x28] sm:$0xff]  ;;  %vm159_vm1 = vcmask 523264  }
  0x38   :  { %v68_v7 = vld [vmem:[#allocation5 + $0x38] sm:$0xff]  ;;  %v285_v8 = vpack.c.bf16 %v63_v5, %v61_v3  ;;  %v65_v10 = vld [vmem:[#allocation5 + $0x20] sm:$0xff]  ;;  %v67_v11 = vld [vmem:[#allocation5 + $0x30] sm:$0xff]  ;;  %v237_v36 = vshrl.u32 %v236_v35, 7 }
  0x39   :  { %v287_v9 = vpack.c.bf16 %v68_v7, %v66_v6  ;;  %v70_v12 = vld [vmem:[#allocation5 + $0x48] sm:$0xff]  ;;  %284 = vmatprep.subr.bf16.mxu0 %v283_v4  ;;  %v72_v13 = vld [vmem:[#allocation5 + $0x58] sm:$0xff]  ;;  %v289_v16 = vpack.c.bf16 %v67_v11, %v65_v10  ;;  %v78_v18 = vld [vmem:[#allocation7] sm:$0xff] }
  0x3a   :  { %v79_v14 = vld [vmem:[#allocation7 + $0x8] sm:$0xff]  ;;  %v81_v15 = vld [vmem:[#allocation7 + $0x18] sm:$0xff]  ;;  %286 = vmatpush1.bf16.msra.mxu0 %v285_v8  ;;  %v291_v19 = vpack.c.bf16 %v72_v13, %v70_v12  ;;  %v69_v20 = vld [vmem:[#allocation5 + $0x40] sm:$0xff]  ;;  %v238_v39 = vsub.s32 0, %v237_v36  ;;  %v242_v41 = vsub.s32 1, %v237_v36 }
  0x3b   :  { %v279_v17 = vpack.c.bf16 %v81_v15, %v79_v14  ;;  %288 = vmatprep.subr.bf16.mxu0 %v287_v9  ;;  %v71_v21 = vld [vmem:[#allocation5 + $0x50] sm:$0xff]  ;;  %v74_v24 = vld [vmem:[#allocation5 + $0x68] sm:$0xff]  ;;  %v76_v25 = vld [vmem:[#allocation5 + $0x78] sm:$0xff] }
  0x3c   :  { %v80_v22 = vld [vmem:[#allocation7 + $0x10] sm:$0xff]  ;;  %v83_v26 = vld [vmem:[#allocation7 + $0x28] sm:$0xff]  ;;  %v293_v27 = vpack.c.bf16 %v71_v21, %v69_v20  ;;  %v295_v28 = vpack.c.bf16 %v76_v25, %v74_v24  ;;  %v73_v29 = vld [vmem:[#allocation5 + $0x60] sm:$0xff] }
  0x3d   :  { %280 = vmatprep.subr.bf16.mxu1 %v279_v17  ;;  %v281_v23 = vpack.c.bf16 %v80_v22, %v78_v18  ;;  %v75_v30 = vld [vmem:[#allocation5 + $0x70] sm:$0xff]  ;;  %v82_v31 = vld [vmem:[#allocation7 + $0x20] sm:$0xff]  ;;  %v77_v32 = vld [vmem:[%s500_s1] sm:$0x3]  ;;  %s408_s1 = smov [#allocation8]  }
  0x3e   :  { %290 = vmatpush1.bf16.msra.mxu0 %v289_v16  ;;  %v297_v33 = vpack.c.bf16 %v75_v30, %v73_v29  ;;  %v60_v34 = vld [vmem:[#allocation2] sm:$0x3]  ;;  %s266_s7 = sshll.u32 %s408_s1, 4  ;;  %s267_s7 = int_to_ptr.vmem [resolvable:$true] %s266_s7 }
  0x3f   :  { %282 = vmatpush1.bf16.msra.mxu1 %v281_v23  ;;  %292 = vmatprep.subr.bf16.mxu0 %v291_v19  ;;  %v234_v40 = vld [vmem:[%s503_s4] sm:$0x3]  ;;  %s374_s8 = scalar_lea.vmem %s267_s7, 64  ;;  %p379_p11 = scmp.lt.s32.totalorder %s267_s7, %s267_s7 }
  0x40   :  { %92 = vmatprep.subr.mxu1 %v83_v26  ;;  %v239_v42 = vrot.slane %v234_v40, %v238_v39  ;;  %v243_v44 = vrot.slane %v234_v40, %v242_v41  ;;  %p375_p10 = scmp.ne.s32.totalorder %s267_s7, %s374_s8  ;;  %p380_p12 = scmp.lt.s32.totalorder %s374_s8, %s374_s8 }
  0x42   :  { %294 = vmatpush1.bf16.msra.mxu0 %v293_v27  ;;  %p381_p13 = por %p380_p12, %p379_p11 }
  0x43   :  { %93 = vmatpush1.msra.mxu1 %v82_v31  ;;  %296 = vmatprep.subr.bf16.mxu0 %v295_v28 }
  0x44   :  { %276 = vmatmul.mubr.msk.f32.vlgmr.msra.gmra.mrb[0].mxu1 %vm84_vm0, %v77_v32  ;;  %p382_p0 = pnand %p381_p13, %p375_p10 }
  0x46   :  { %298 = vmatpush1.bf16.msra.mxu0 %v297_v33 }
  0x49   :  { %277 = vmatmul.mubr.msk.f32.vlgmr.msra.gmra.mrb[0].mxu0 %vm159_vm1, %v60_v34 }
 0x117   :  { %v154_v37 = vpop.f32.mrb[0].mxu1 }
 0x118   :  { %v156_v38 = vpop.f32.mrb[1].mxu1 }
 0x11c   :  { %v229_v43 = vpop.f32.mrb[0].mxu0 }
 0x11d   :  { %v230_v45 = vadd.f32 %v229_v43, %v154_v37  ;;  %v231_v46 = vpop.f32.mrb[1].mxu0 }
 0x11e   :  { %v232_v47 = vadd.f32 %v231_v46, %v156_v38 }
 0x11f   :  { %v246_v48 = vadd.f32 %v239_v42, %v230_v45 }
 0x120   :  { %v247_v49 = vadd.f32 %v243_v44, %v232_v47 }
 0x122   :  { %v250_v50 = vcombine.low %v246_v48, %v247_v49 }
 0x124   :  { %278 = vst.sshfl [vmem:[#allocation8] sm:$0x33 pattern:$0x76325410] %v250_v50 }
 0x125   :  { %385 = shalt.err (!%p382_p0)
}
 0x126   :  { %s386_s10 = scalar_lea.hbm %s504_s5, 64 }
 0x127   :  { %p387_p1 = scmp.ne.s32.totalorder %s504_s5, %s386_s10  ;;  %p390_p2 = scmp.lt.u32.totalorder %s386_s10, %s504_s5 }
 0x129   :  { %p392_p3 = pnand %p390_p2, %p387_p1 }
 0x12b   :  { %395 = shalt.err (!%p392_p3)
}
 0x12c   :  { %269 = dma.vmem_to_hbm [thread:$0]  %s267_s7, 64, %s504_s5, [#allocation4]  }
 0x12d   :  { %400 = dma.done.wait [#allocation4], 64  }
 0x12e   :  { %401 = vsyncadd [#allocation4], 4294967232 }
 0x12f   :  { %273 = vsyncpa [#allocation3], 1 }
 0x130   :  { %274 = vsyncpa [#allocation6], 1 }
 0x131   :  { %275 = vsyncpa [#allocation4], 1 }

</bundles_post_ra>
